<compile_context>
chip_gen: v5e
topology: v5e:2x2
jax: 0.10.0
libtpu: 0.0.40
codegen_flags: <defaults>
</compile_context>

<pallas_src>
import functools

import jax
import jax.numpy as jnp
from jax.experimental import pallas as pl
from jax.experimental.pallas import tpu as pltpu


def _global_block_kernel(batch_ref, x_ref, w1_ref, b1_ref, gamma_ref, beta_ref,
                         w2_ref, b2_ref, out_ref, sums_ref, counts_ref,
                         *, num_graphs, mxu_dtype):
    k = pl.program_id(0)
    b_pad = sums_ref.shape[0]
    tn = x_ref.shape[0]

    # ---- init accumulators on the first N-tile ----
    @pl.when(k == 0)
    def _init():
        sums_ref[...] = jnp.zeros_like(sums_ref)
        counts_ref[...] = jnp.zeros_like(counts_ref)

    # ---- scatter-sum of this N-tile: one-hot mask matmul on the MXU ----
    batch_ids = batch_ref[...]                                       # [1, TN] int32
    gids = jax.lax.broadcasted_iota(jnp.int32, (b_pad, tn), 0)       # [B_pad, TN]
    onehot = gids == batch_ids                                       # [B_pad, TN] bool
    mask = onehot.astype(mxu_dtype)                                  # exact 0/1 in bf16
    x_tile = x_ref[...].astype(mxu_dtype)
    sums_ref[...] += jnp.dot(mask, x_tile, preferred_element_type=jnp.float32)
    counts_ref[...] += jnp.sum(onehot.astype(jnp.float32), axis=-1, keepdims=True)

    # ---- finalize on the last N-tile: mean -> Linear -> BN -> ReLU -> Linear ----
    @pl.when(k == pl.num_programs(0) - 1)
    def _final():
        inv_cnt = pl.reciprocal(jnp.maximum(counts_ref[...], 1.0), approx=True)
        mean = (sums_ref[...] * inv_cnt).astype(mxu_dtype)           # [B_pad, 128]

        # Linear(128, 128)
        h = jnp.dot(mean, w1_ref[...].astype(mxu_dtype),
                    preferred_element_type=jnp.float32) + b1_ref[...]

        # BatchNorm1d(128), batch statistics over the real num_graphs rows only
        row_valid = (jax.lax.broadcasted_iota(jnp.int32, (b_pad, 1), 0)
                     < num_graphs).astype(jnp.float32)
        inv_b = 1.0 / float(num_graphs)
        mu = jnp.sum(h * row_valid, axis=0, keepdims=True) * inv_b
        var = jnp.sum(((h - mu) ** 2) * row_valid, axis=0, keepdims=True) * inv_b
        hn = (h - mu) * jax.lax.rsqrt(var + 1e-5) * gamma_ref[...] + beta_ref[...]

        # ReLU
        hr = jnp.maximum(hn, 0.0)

        # Linear(128, 6) (padded to 128 output lanes for a lane-dense store)
        out_ref[...] = jnp.dot(hr.astype(mxu_dtype), w2_ref[...].astype(mxu_dtype),
                               preferred_element_type=jnp.float32) + b2_ref[...]


def global_block(x, batch, params, num_graphs, *, tile_n=1024,
                 mxu_dtype=jnp.bfloat16, vmem_limit_bytes=32 * 1024 * 1024):
    """x: [N, 128] f32, batch: [N] int graph ids, returns [num_graphs, 6] f32."""
    N, D = x.shape
    assert D == 128, "GlobalBlock is fixed at 128 input features"
    w1, b1, gamma, beta, w2, b2 = params
    dout = w2.shape[1]

    # Sublane-dense graph dim; lane-dense output dim.
    B_pad = max(8, pl.cdiv(num_graphs, 8) * 8)
    OUT_PAD = 128
    w2p = jnp.zeros((D, OUT_PAD), jnp.float32).at[:, :dout].set(w2)
    b2p = jnp.zeros((1, OUT_PAD), jnp.float32).at[:, :dout].set(b2)

    # Tile N; TN must be a multiple of 128 (batch-id block lane constraint).
    TN = min(tile_n, pl.cdiv(N, 128) * 128)
    N_pad = pl.cdiv(N, TN) * TN
    x_p = jnp.zeros((N_pad, D), jnp.float32).at[:N].set(x.astype(jnp.float32))
    # Padded nodes get batch id -1 so they never match any graph row.
    batch_p = jnp.full((1, N_pad), -1, jnp.int32).at[0, :N].set(batch.astype(jnp.int32))

    kernel = functools.partial(_global_block_kernel,
                               num_graphs=num_graphs, mxu_dtype=mxu_dtype)
    resident = lambda shape: pl.BlockSpec(shape, lambda k: (0, 0))

    out = pl.pallas_call(
        kernel,
        out_shape=jax.ShapeDtypeStruct((B_pad, OUT_PAD), jnp.float32),
        grid_spec=pltpu.PrefetchScalarGridSpec(
            num_scalar_prefetch=0,
            grid=(N_pad // TN,),
            in_specs=[
                pl.BlockSpec((1, TN), lambda k: (0, k)),    # batch ids (tiled over N)
                pl.BlockSpec((TN, D), lambda k: (k, 0)),    # x          (tiled over N)
                resident((D, D)),                           # W1  [in, out]
                resident((1, D)),                           # b1
                resident((1, D)),                           # gamma
                resident((1, D)),                           # beta
                resident((D, OUT_PAD)),                     # W2 (lane-padded)
                resident((1, OUT_PAD)),                     # b2 (lane-padded)
            ],
            out_specs=pl.BlockSpec((B_pad, OUT_PAD), lambda k: (0, 0)),
            scratch_shapes=[
                pltpu.VMEM((B_pad, D), jnp.float32),        # per-graph feature sums
                pltpu.VMEM((B_pad, 1), jnp.float32),        # per-graph node counts
            ],
        ),
        compiler_params=pltpu.CompilerParams(
            dimension_semantics=("arbitrary",),             # N is a reduction axis
            vmem_limit_bytes=vmem_limit_bytes,
        ),
    )(batch_p, x_p, w1, b1, gamma, beta, w2p, b2p)

    return out[:num_graphs, :dout]


def init_params(key, din=128, dhid=128, dout=6):
    k1, k2, k3, k4 = jax.random.split(key, 4)
    # PyTorch Linear default init: U(-1/sqrt(fan_in), 1/sqrt(fan_in)); weights stored [in, out].
    lim1 = 1.0 / jnp.sqrt(din)
    w1 = jax.random.uniform(k1, (din, dhid), jnp.float32, -lim1, lim1)
    b1 = jax.random.uniform(k2, (1, dhid), jnp.float32, -lim1, lim1)
    gamma = jnp.ones((1, dhid), jnp.float32)   # BatchNorm1d default weight
    beta = jnp.zeros((1, dhid), jnp.float32)   # BatchNorm1d default bias
    lim2 = 1.0 / jnp.sqrt(dhid)
    w2 = jax.random.uniform(k3, (dhid, dout), jnp.float32, -lim2, lim2)
    b2 = jax.random.uniform(k4, (1, dout), jnp.float32, -lim2, lim2)
    return (w1, b1, gamma, beta, w2, b2)


if __name__ == "__main__":
    key = jax.random.PRNGKey(0)
    kx, kp = jax.random.split(key)

    # 200 nodes, 128 features (fixed by module), 4 graphs -> 2 grid steps at TN=128.
    N, D, B = 200, 128, 4
    x = jax.random.normal(kx, (N, D), jnp.float32)
    batch = jnp.repeat(jnp.arange(B, dtype=jnp.int32), N // B)
    # edge_index / edge_attr / u are unused by the forward pass (as in the module).

    params = init_params(kp, D, D, 6)
    out = global_block(x, batch, params, num_graphs=B, tile_n=128)
    jax.block_until_ready(out)
    assert out.shape == (B, 6) and out.dtype == jnp.float32
    assert bool(jnp.all(jnp.isfinite(out)))
    print("KERNEL_OK")
</pallas_src>

<mosaic_0001>
module attributes {stable_mosaic.version = 11 : i64} {
  func.func @_global_block_kernel(%arg0: i32, %arg1: memref<1x128xi32, #tpu.memory_space<vmem>>, %arg2: memref<128x128xf32, #tpu.memory_space<vmem>>, %arg3: memref<128x128xf32, #tpu.memory_space<vmem>>, %arg4: memref<1x128xf32, #tpu.memory_space<vmem>>, %arg5: memref<1x128xf32, #tpu.memory_space<vmem>>, %arg6: memref<1x128xf32, #tpu.memory_space<vmem>>, %arg7: memref<128x128xf32, #tpu.memory_space<vmem>>, %arg8: memref<1x128xf32, #tpu.memory_space<vmem>>, %arg9: memref<8x128xf32, #tpu.memory_space<vmem>>, %arg10: memref<8x128xf32, #tpu.memory_space<vmem>>, %arg11: memref<8x1xf32, #tpu.memory_space<vmem>>) attributes {dimension_semantics = [#tpu.dimension_semantics<arbitrary>], iteration_bounds = array<i64: 2>, scalar_prefetch = 0 : i64, scratch_operands = 2 : i64, tpu.core_type = #tpu.core_type<tc>, window_params = [{transform_indices = @transform_0, window_bounds = array<i64: 1, 128>}, {transform_indices = @transform_1, window_bounds = array<i64: 128, 128>}, {pipeline_mode = #tpu.pipeline_mode<synchronous>, transform_indices = @transform_2, window_bounds = array<i64: 128, 128>}, {pipeline_mode = #tpu.pipeline_mode<synchronous>, transform_indices = @transform_3, window_bounds = array<i64: 1, 128>}, {pipeline_mode = #tpu.pipeline_mode<synchronous>, transform_indices = @transform_4, window_bounds = array<i64: 1, 128>}, {pipeline_mode = #tpu.pipeline_mode<synchronous>, transform_indices = @transform_5, window_bounds = array<i64: 1, 128>}, {pipeline_mode = #tpu.pipeline_mode<synchronous>, transform_indices = @transform_6, window_bounds = array<i64: 128, 128>}, {pipeline_mode = #tpu.pipeline_mode<synchronous>, transform_indices = @transform_7, window_bounds = array<i64: 1, 128>}, {pipeline_mode = #tpu.pipeline_mode<synchronous>, transform_indices = @transform_8, window_bounds = array<i64: 8, 128>}]} {
    %c0_i32 = arith.constant 0 : i32
    %0 = arith.cmpi eq, %arg0, %c0_i32 : i32
    %1 = arith.extui %0 : i1 to i32
    %c0_i32_0 = arith.constant 0 : i32
    %2 = arith.cmpi ne, %1, %c0_i32_0 : i32
    scf.if %2 {
      %cst_14 = arith.constant 0.000000e+00 : f32
      %26 = vector.broadcast %cst_14 : f32 to vector<8x128xf32>
      %c0_15 = arith.constant 0 : index
      %c0_16 = arith.constant 0 : index
      %27 = vector.load %arg10[%c0_15, %c0_16] : memref<8x128xf32, #tpu.memory_space<vmem>>, vector<8x128xf32>
      tpu.vector_store %arg10[%c0_15, %c0_16], %26 {strides = array<i32>} : memref<8x128xf32, #tpu.memory_space<vmem>>, vector<8x128xf32>,
      %cst_17 = arith.constant 0.000000e+00 : f32
      %28 = vector.broadcast %cst_17 : f32 to vector<8x1xf32>
      %c0_18 = arith.constant 0 : index
      %c0_19 = arith.constant 0 : index
      %29 = vector.load %arg11[%c0_18, %c0_19] : memref<8x1xf32, #tpu.memory_space<vmem>>, vector<8x1xf32>
      tpu.vector_store %arg11[%c0_18, %c0_19], %28 {strides = array<i32>} : memref<8x1xf32, #tpu.memory_space<vmem>>, vector<8x1xf32>,
    } else {
    }
    %c0 = arith.constant 0 : index
    %c0_1 = arith.constant 0 : index
    %3 = vector.load %arg1[%c0, %c0_1] : memref<1x128xi32, #tpu.memory_space<vmem>>, vector<1x128xi32>
    %4 = tpu.iota {dimensions = array<i32: 0>} : vector<8x128xi32>
    %5 = vector.broadcast %3 : vector<1x128xi32> to vector<8x128xi32>
    %6 = arith.cmpi eq, %4, %5 : vector<8x128xi32>
    %7 = arith.extui %6 : vector<8x128xi1> to vector<8x128xi32>
    %8 = arith.sitofp %7 : vector<8x128xi32> to vector<8x128xf32>
    %9 = arith.truncf %8 : vector<8x128xf32> to vector<8x128xbf16>
    %c0_2 = arith.constant 0 : index
    %c0_3 = arith.constant 0 : index
    %10 = vector.load %arg2[%c0_2, %c0_3] : memref<128x128xf32, #tpu.memory_space<vmem>>, vector<128x128xf32>
    %11 = arith.truncf %10 : vector<128x128xf32> to vector<128x128xbf16>
    %c0_4 = arith.constant 0 : index
    %c0_5 = arith.constant 0 : index
    %12 = vector.load %arg10[%c0_4, %c0_5] : memref<8x128xf32, #tpu.memory_space<vmem>>, vector<8x128xf32>
    %cst = arith.constant dense<0.000000e+00> : vector<8x128xf32>
    %13 = tpu.matmul %9, %11, %cst {dimension_numbers = #tpu.dot_dimension_numbers<[1], [0], [0], [1], [0, 0, 1, 1], [], []>} : vector<8x128xbf16>, vector<128x128xbf16>, vector<8x128xf32> -> vector<8x128xf32>
    %14 = arith.addf %12, %13 : vector<8x128xf32>
    %c0_6 = arith.constant 0 : index
    %c0_7 = arith.constant 0 : index
    %15 = vector.load %arg10[%c0_6, %c0_7] : memref<8x128xf32, #tpu.memory_space<vmem>>, vector<8x128xf32>
    tpu.vector_store %arg10[%c0_6, %c0_7], %14 {strides = array<i32>} : memref<8x128xf32, #tpu.memory_space<vmem>>, vector<8x128xf32>,
    %c0_8 = arith.constant 0 : index
    %c0_9 = arith.constant 0 : index
    %16 = vector.load %arg11[%c0_8, %c0_9] : memref<8x1xf32, #tpu.memory_space<vmem>>, vector<8x1xf32>
    %17 = arith.extui %6 : vector<8x128xi1> to vector<8x128xi32>
    %18 = arith.sitofp %17 : vector<8x128xi32> to vector<8x128xf32>
    %cst_10 = arith.constant dense<0.000000e+00> : vector<8xf32>
    %19 = vector.multi_reduction <add>, %18, %cst_10 [1] : vector<8x128xf32> to vector<8xf32>
    %20 = vector.shape_cast %19 : vector<8xf32> to vector<8x1xf32>
    %21 = arith.addf %16, %20 : vector<8x1xf32>
    %c0_11 = arith.constant 0 : index
    %c0_12 = arith.constant 0 : index
    %22 = vector.load %arg11[%c0_11, %c0_12] : memref<8x1xf32, #tpu.memory_space<vmem>>, vector<8x1xf32>
    tpu.vector_store %arg11[%c0_11, %c0_12], %21 {strides = array<i32>} : memref<8x1xf32, #tpu.memory_space<vmem>>, vector<8x1xf32>,
    %c1_i32 = arith.constant 1 : i32
    %23 = arith.cmpi eq, %arg0, %c1_i32 : i32
    %24 = arith.extui %23 : i1 to i32
    %c0_i32_13 = arith.constant 0 : i32
    %25 = arith.cmpi ne, %24, %c0_i32_13 : i32
    scf.if %25 {
      %c0_14 = arith.constant 0 : index
      %c0_15 = arith.constant 0 : index
      %26 = vector.load %arg11[%c0_14, %c0_15] : memref<8x1xf32, #tpu.memory_space<vmem>>, vector<8x1xf32>
      %cst_16 = arith.constant 1.000000e+00 : f32
      %27 = vector.broadcast %cst_16 : f32 to vector<8x1xf32>
      %28 = arith.maximumf %26, %27 : vector<8x1xf32>
      %29 = tpu.reciprocal %28 {approx = true} : vector<8x1xf32> -> vector<8x1xf32>
      %c0_17 = arith.constant 0 : index
      %c0_18 = arith.constant 0 : index
      %30 = vector.load %arg10[%c0_17, %c0_18] : memref<8x128xf32, #tpu.memory_space<vmem>>, vector<8x128xf32>
      %31 = vector.broadcast %29 : vector<8x1xf32> to vector<8x128xf32>
      %32 = arith.mulf %30, %31 : vector<8x128xf32>
      %33 = arith.truncf %32 : vector<8x128xf32> to vector<8x128xbf16>
      %c0_19 = arith.constant 0 : index
      %c0_20 = arith.constant 0 : index
      %34 = vector.load %arg3[%c0_19, %c0_20] : memref<128x128xf32, #tpu.memory_space<vmem>>, vector<128x128xf32>
      %35 = arith.truncf %34 : vector<128x128xf32> to vector<128x128xbf16>
      %cst_21 = arith.constant dense<0.000000e+00> : vector<8x128xf32>
      %36 = tpu.matmul %33, %35, %cst_21 {dimension_numbers = #tpu.dot_dimension_numbers<[1], [0], [0], [1], [0, 0, 1, 1], [], []>} : vector<8x128xbf16>, vector<128x128xbf16>, vector<8x128xf32> -> vector<8x128xf32>
      %c0_22 = arith.constant 0 : index
      %c0_23 = arith.constant 0 : index
      %37 = vector.load %arg4[%c0_22, %c0_23] : memref<1x128xf32, #tpu.memory_space<vmem>>, vector<1x128xf32>
      %38 = vector.broadcast %37 : vector<1x128xf32> to vector<8x128xf32>
      %39 = arith.addf %36, %38 : vector<8x128xf32>
      %40 = tpu.iota {dimensions = array<i32: 0>} : vector<8x1xi32>
      %c4_i32 = arith.constant 4 : i32
      %41 = vector.broadcast %c4_i32 : i32 to vector<8x1xi32>
      %42 = arith.cmpi slt, %40, %41 : vector<8x1xi32>
      %43 = arith.extui %42 : vector<8x1xi1> to vector<8x1xi32>
      %44 = arith.sitofp %43 : vector<8x1xi32> to vector<8x1xf32>
      %45 = vector.broadcast %44 : vector<8x1xf32> to vector<8x128xf32>
      %46 = arith.mulf %39, %45 : vector<8x128xf32>
      %cst_24 = arith.constant dense<0.000000e+00> : vector<128xf32>
      %47 = vector.multi_reduction <add>, %46, %cst_24 [0] : vector<8x128xf32> to vector<128xf32>
      %48 = vector.shape_cast %47 : vector<128xf32> to vector<1x128xf32>
      %cst_25 = arith.constant 2.500000e-01 : f32
      %49 = vector.broadcast %cst_25 : f32 to vector<1x128xf32>
      %50 = arith.mulf %48, %49 : vector<1x128xf32>
      %51 = vector.broadcast %50 : vector<1x128xf32> to vector<8x128xf32>
      %52 = arith.subf %39, %51 : vector<8x128xf32>
      %53 = arith.mulf %52, %52 : vector<8x128xf32>
      %54 = vector.broadcast %44 : vector<8x1xf32> to vector<8x128xf32>
      %55 = arith.mulf %53, %54 : vector<8x128xf32>
      %cst_26 = arith.constant dense<0.000000e+00> : vector<128xf32>
      %56 = vector.multi_reduction <add>, %55, %cst_26 [0] : vector<8x128xf32> to vector<128xf32>
      %57 = vector.shape_cast %56 : vector<128xf32> to vector<1x128xf32>
      %cst_27 = arith.constant 2.500000e-01 : f32
      %58 = vector.broadcast %cst_27 : f32 to vector<1x128xf32>
      %59 = arith.mulf %57, %58 : vector<1x128xf32>
      %60 = vector.broadcast %50 : vector<1x128xf32> to vector<8x128xf32>
      %61 = arith.subf %39, %60 : vector<8x128xf32>
      %cst_28 = arith.constant 9.99999974E-6 : f32
      %62 = vector.broadcast %cst_28 : f32 to vector<1x128xf32>
      %63 = arith.addf %59, %62 : vector<1x128xf32>
      %64 = math.rsqrt %63 : vector<1x128xf32>
      %65 = vector.broadcast %64 : vector<1x128xf32> to vector<8x128xf32>
      %66 = arith.mulf %61, %65 : vector<8x128xf32>
      %c0_29 = arith.constant 0 : index
      %c0_30 = arith.constant 0 : index
      %67 = vector.load %arg5[%c0_29, %c0_30] : memref<1x128xf32, #tpu.memory_space<vmem>>, vector<1x128xf32>
      %68 = vector.broadcast %67 : vector<1x128xf32> to vector<8x128xf32>
      %69 = arith.mulf %66, %68 : vector<8x128xf32>
      %c0_31 = arith.constant 0 : index
      %c0_32 = arith.constant 0 : index
      %70 = vector.load %arg6[%c0_31, %c0_32] : memref<1x128xf32, #tpu.memory_space<vmem>>, vector<1x128xf32>
      %71 = vector.broadcast %70 : vector<1x128xf32> to vector<8x128xf32>
      %72 = arith.addf %69, %71 : vector<8x128xf32>
      %cst_33 = arith.constant 0.000000e+00 : f32
      %73 = vector.broadcast %cst_33 : f32 to vector<8x128xf32>
      %74 = arith.maximumf %72, %73 : vector<8x128xf32>
      %75 = arith.truncf %74 : vector<8x128xf32> to vector<8x128xbf16>
      %c0_34 = arith.constant 0 : index
      %c0_35 = arith.constant 0 : index
      %76 = vector.load %arg7[%c0_34, %c0_35] : memref<128x128xf32, #tpu.memory_space<vmem>>, vector<128x128xf32>
      %77 = arith.truncf %76 : vector<128x128xf32> to vector<128x128xbf16>
      %cst_36 = arith.constant dense<0.000000e+00> : vector<8x128xf32>
      %78 = tpu.matmul %75, %77, %cst_36 {dimension_numbers = #tpu.dot_dimension_numbers<[1], [0], [0], [1], [0, 0, 1, 1], [], []>} : vector<8x128xbf16>, vector<128x128xbf16>, vector<8x128xf32> -> vector<8x128xf32>
      %c0_37 = arith.constant 0 : index
      %c0_38 = arith.constant 0 : index
      %79 = vector.load %arg8[%c0_37, %c0_38] : memref<1x128xf32, #tpu.memory_space<vmem>>, vector<1x128xf32>
      %80 = vector.broadcast %79 : vector<1x128xf32> to vector<8x128xf32>
      %81 = arith.addf %78, %80 : vector<8x128xf32>
      %c0_39 = arith.constant 0 : index
      %c0_40 = arith.constant 0 : index
      %82 = vector.load %arg9[%c0_39, %c0_40] : memref<8x128xf32, #tpu.memory_space<vmem>>, vector<8x128xf32>
      tpu.vector_store %arg9[%c0_39, %c0_40], %81 {strides = array<i32>} : memref<8x128xf32, #tpu.memory_space<vmem>>, vector<8x128xf32>,
    } else {
    }
    return
  }
  func.func @transform_0(%arg0: i32) -> (i32, i32) {
    %c0_i32 = arith.constant 0 : i32
    %c0_i32_0 = arith.constant 0 : i32
    return %c0_i32, %arg0 : i32, i32
  }
  func.func @transform_1(%arg0: i32) -> (i32, i32) {
    %c0_i32 = arith.constant 0 : i32
    %c0_i32_0 = arith.constant 0 : i32
    return %arg0, %c0_i32 : i32, i32
  }
  func.func @transform_2(%arg0: i32) -> (i32, i32) {
    %c0_i32 = arith.constant 0 : i32
    %c0_i32_0 = arith.constant 0 : i32
    %c0_i32_1 = arith.constant 0 : i32
    return %c0_i32, %c0_i32_0 : i32, i32
  }
  func.func @transform_3(%arg0: i32) -> (i32, i32) {
    %c0_i32 = arith.constant 0 : i32
    %c0_i32_0 = arith.constant 0 : i32
    %c0_i32_1 = arith.constant 0 : i32
    return %c0_i32, %c0_i32_0 : i32, i32
  }
  func.func @transform_4(%arg0: i32) -> (i32, i32) {
    %c0_i32 = arith.constant 0 : i32
    %c0_i32_0 = arith.constant 0 : i32
    %c0_i32_1 = arith.constant 0 : i32
    return %c0_i32, %c0_i32_0 : i32, i32
  }
  func.func @transform_5(%arg0: i32) -> (i32, i32) {
    %c0_i32 = arith.constant 0 : i32
    %c0_i32_0 = arith.constant 0 : i32
    %c0_i32_1 = arith.constant 0 : i32
    return %c0_i32, %c0_i32_0 : i32, i32
  }
  func.func @transform_6(%arg0: i32) -> (i32, i32) {
    %c0_i32 = arith.constant 0 : i32
    %c0_i32_0 = arith.constant 0 : i32
    %c0_i32_1 = arith.constant 0 : i32
    return %c0_i32, %c0_i32_0 : i32, i32
  }
  func.func @transform_7(%arg0: i32) -> (i32, i32) {
    %c0_i32 = arith.constant 0 : i32
    %c0_i32_0 = arith.constant 0 : i32
    %c0_i32_1 = arith.constant 0 : i32
    return %c0_i32, %c0_i32_0 : i32, i32
  }
  func.func @transform_8(%arg0: i32) -> (i32, i32) {
    %c0_i32 = arith.constant 0 : i32
    %c0_i32_0 = arith.constant 0 : i32
    %c0_i32_1 = arith.constant 0 : i32
    return %c0_i32, %c0_i32_0 : i32, i32
  }
}

</mosaic_0001>

<bundles_post_ra>
// kernel: tpu_custom_call.1
= control target key start
LH: loop header
LB: loop body
LE: loop exit
PB: predicated region body
PF: predicated region fallthrough
CT: control target
= control target key end

     0   :  { %s1246_s0 = inlined_call_operand.hbm [shape: s32[1,256], index: 0, kind: input, shape index: {}]   ;;  %s1247_s1 = inlined_call_operand.hbm [shape: f32[256,128], index: 1, kind: input, shape index: {}]   ;;  %s1248_s2 = inlined_call_operand.hbm [shape: f32[128,128], index: 2, kind: input, shape index: {}]   ;;  %s1249_s3 = inlined_call_operand.vmem [shape: f32[1,128], index: 3, kind: input, shape index: {}]   ;;  %s1250_s4 = inlined_call_operand.vmem [shape: f32[1,128], index: 4, kind: input, shape index: {}]   ;;  %s1251_s5 = inlined_call_operand.vmem [shape: f32[1,128], index: 5, kind: input, shape index: {}]   ;;  %s1252_s6 = inlined_call_operand.hbm [shape: f32[128,128], index: 6, kind: input, shape index: {}]   ;;  %s1253_s7 = inlined_call_operand.vmem [shape: f32[1,128], index: 7, kind: input, shape index: {}]   ;;  %s1254_s8 = inlined_call_operand.hbm [shape: f32[8,128], index: 8, kind: output, shape index: {}]  }
   0x1   :  { %1257 = sst [smem:[#allocation19_spill]] %s1248_s2 }
   0x2   :  { %1258 = sst [smem:[#allocation20_spill]] %s1252_s6 }
   0x3   :  { %13 = vsyncpa [#allocation5], 0 }
   0x4   :  { %15 = vsyncpa [#allocation5 + $0x1], 0 }
   0x5   :  { %16 = vsyncpa [#allocation8], 0 }
   0x6   :  { %18 = vsyncpa [#allocation8 + $0x1], 0 }
   0x7   :  { %19 = vsyncpa [#allocation11], 0 }
   0x8   :  { %20 = vsyncpa [#allocation6], 0  ;;  %s1051_s27 = smov 0   ;;  %s1053_s28 = smov 0  }
   0x9   :  { %s1055_s29 = smov 0   ;;  %s1057_s30 = smov 0  }
   0xa LB: > { %s1259_s2 = sld [smem:[#allocation19_spill]]  ;;  %s1075_s12 = sadd.s32 4294967295, %s994_s30   ;;  %s994_s30 = sphi %s1057_s30, %s1271_s30   ;;  %s990_s29 = sphi %s1055_s29, %s1270_s29   ;;  %s986_s28 = sphi %s1053_s28, %s1269_s28   ;;  %s982_s27 = sphi %s1051_s27, %s1268_s27  }
   0xb   : > { %p685_p0 = scmp.ge.s32.totalorder %s994_s30, 1  ;;  %p47_p1 = scmp.eq.s32.totalorder %s1075_s12, 0 }
   0xc   : > { %p230_p2 = scmp.lt.s32.totalorder %s994_s30, 3  ;;  %p686_p3 = scmp.ne.s32.totalorder %s1075_s12, 0 }
   0xd   : > { %s996_s14 = smov [#allocation9]   ;;  %s1261_s6 = sld [smem:[#allocation20_spill]] }
   0xe   : > { %p1081_p4 = pnand %p685_p0, %p230_p2  ;;  %s243_s15 = sshll.u32 %s996_s14, 4  ;;  %s244_s15 = int_to_ptr.vmem [resolvable:$true] %s243_s15 }
   0xf   : > { %s997_s19 = smov [#allocation10]   ;;  %s1255_s21 = smov 128  }
  0x10   : > { %s241_s11 = sshll.u32 %s1259_s2, 4  ;;  %p723_p5 = pneg %p1081_p4  ;;  %s242_s11 = int_to_ptr.hbm [resolvable:$true] %s241_s11 }
  0x11   : > { %s266_s20 = sshll.u32 %s997_s19, 4  ;;  %s1256_s22 = smov 8   ;;  %s267_s20 = int_to_ptr.vmem [resolvable:$true] %s266_s20 }
  0x12   : > { %p724_p6 = pnand %p723_p5, %p47_p1  ;;  %s1099_s23 = sadd.s32 1, %s994_s30  }
  0x13   : > { %s264_s18 = sshll.u32 %s1261_s6, 4  ;;  %s33_s24 = sadd.s32 1, %s990_s29  ;;  %s265_s18 = int_to_ptr.hbm [resolvable:$true] %s264_s18 }
  0x14   : > { %726 = dma.hbm_to_vmem [thread:$0]  (!%p724_p6), %s242_s11, 2048, %s244_s15, [#allocation8], %s1255_s21, %s1255_s21, %s1256_s22  }
  0x15   : > { %729 = dma.hbm_to_vmem [thread:$0]  (!%p724_p6), %s265_s18, 2048, %s267_s20, [#allocation11], %s1255_s21, %s1255_s21, %s1256_s22  }
  0x16   : > { %s30_s25 = ssub.s32 %s994_s30, %s1099_s23  ;;  %p40_p7 = scmp.ne.s32.totalorder %s990_s29, %s986_s28 }
  0x17   : > { %p31_p8 = scmp.eq.s32.totalorder %s30_s25, 0  ;;  %p41_p9 = scmp.eq.s32.totalorder %s994_s30, 0 }
  0x18   : > { %p46_p10 = scmp.ne.s32.totalorder %s986_s28, %s982_s27  ;;  %p739_p11 = scmp.lt.s32.totalorder %s994_s30, 2 }
  0x19   : > { %s1111_s26 = scalar_select %p31_p8, %s990_s29, %s33_s24  }
  0x1a   : > { %p42_p12 = por %p41_p9, %p40_p7  ;;  %p1115_p13 = por %p47_p1, %p46_p10 }
  0x1b   : > { %1262 = sst [smem:[#allocation18_spill]] %s1111_s26  ;;  %s283_s10 = sand.u32 1, %s990_s29  }
  0x1c   : > { %s289_s15 = scalar_lea.hbm %s1246_s0, %s994_s30  ;;  %s286_s17 = scalar_lea.vmem [#allocation4], %s283_s10 }
  0x1d   : > { %s291_s16 = sshll.u32 %s289_s15, 4  ;;  %s293_s18 = sshll.u32 %s286_s17, 4  ;;  %s292_s16 = int_to_ptr.hbm [resolvable:$true] %s291_s16  ;;  %s294_s18 = int_to_ptr.vmem [resolvable:$true] %s293_s18 }
  0x1e   : > { %p1124_p0 = pnand %p739_p11, %p42_p12  ;;  %s689_s19 = sshll.u32 %s283_s10, 7 }
  0x1f   : > { %s300_s20 = sand.u32 1, %s994_s30   ;;  %s304_s24 = scalar_lea.vmem [#allocation7], %s689_s19 }
  0x20   : > { %s312_s25 = sshll.u32 %s304_s24, 4  ;;  %s284_s21 = scalar_lea.sflag [#allocation5], %s283_s10  ;;  %s313_s25 = int_to_ptr.vmem [resolvable:$true] %s312_s25 }
  0x21   : > { %s856_s22 = sshra.s32 %s292_s16, 4  ;;  %p860_p5 = pneg %p1124_p0  ;;  %s857_s22 = int_to_ptr.hbm [resolvable:$true] %s856_s22 }
  0x22   : > { %s858_s11 = scalar_lea.hbm %s857_s22, 1  ;;  %s863_s17 = scalar_lea.hbm %s1246_s0, 2 }
  0x23   : > { %p859_p2 = scmp.ne.s32.totalorder %s857_s22, %s858_s11  ;;  %p864_p8 = scmp.lt.s32.totalorder %s857_s22, %s1246_s0 }
  0x24   : > { %p865_p9 = scmp.lt.s32.totalorder %s863_s17, %s858_s11 }
  0x25   : > { %p861_p6 = pnand %p860_p5, %p859_p2 }
  0x26   : > { %p866_p10 = por %p865_p9, %p864_p8 }
  0x27   : > { %p862_p7 = pneg %p861_p6 }
  0x29   : > { %p867_p11 = pnand %p866_p10, %p862_p7 }
  0x2b   : > { %870 = shalt.err (!%p867_p11)
}
  0x2c   : > { %733 = dma.hbm_to_vmem [thread:$0]  (!%p1124_p0), %s292_s16, 16, %s294_s18, %s284_s21  }
  0x2d   : > { %s706_s10 = sshll.u32 %s994_s30, 7  ;;  %s301_s26 = scalar_lea.sflag [#allocation8], %s300_s20 }
  0x2e   : > { %s309_s14 = scalar_lea.hbm %s1247_s1, %s706_s10  ;;  %s893_s21 = scalar_lea.hbm %s1247_s1, 256 }
  0x2f   : > { %s310_s15 = sshll.u32 %s309_s14, 4  ;;  %s311_s15 = int_to_ptr.hbm [resolvable:$true] %s310_s15 }
  0x30   : > { %s886_s2 = sshra.s32 %s311_s15, 4  ;;  %s887_s2 = int_to_ptr.hbm [resolvable:$true] %s886_s2 }
  0x31   : > { %s888_s6 = scalar_lea.hbm %s887_s2, 128  ;;  %p894_p7 = scmp.lt.s32.totalorder %s887_s2, %s1247_s1 }
  0x32   : > { %p889_p12 = scmp.ne.s32.totalorder %s887_s2, %s888_s6  ;;  %p895_p8 = scmp.lt.s32.totalorder %s893_s21, %s888_s6 }
  0x34   : > { %p891_p2 = pnand %p889_p12, %p860_p5  ;;  %p896_p9 = por %p895_p8, %p894_p7 }
  0x36   : > { %p892_p6 = pneg %p891_p2 }
  0x38   : > { %p897_p10 = pnand %p896_p9, %p892_p6 }
  0x3a   : > { %900 = shalt.err (!%p897_p10)
}
  0x3b   : > { %s1265_s18 = smov 8   ;;  %s1266_s20 = smov 128  }
  0x3c   : > { %736 = dma.hbm_to_vmem [thread:$0]  (!%p1124_p0), %s311_s15, 2048, %s313_s25, %s301_s26, %s1266_s20, %s1266_s20, %s1265_s18  }
  0x3d   : > { %324 = sbr.rel (%p1081_p4) target bundleno = 712 (0x2c8), region = 52  ;;  %s1163_s17 = sand.u32 (!%p1081_p4), 1, %s986_s28  }
  0x3e   : > { %s327_s10 = scalar_lea.sflag (!%p1081_p4), [#allocation5], %s1163_s17  ;;  %s329_s19 = scalar_lea.vmem (!%p1081_p4), [#allocation4], %s1163_s17 }
  0x42   : > { %961 = dma.done.wait (%p1115_p13), %s327_s10, 16  }
  0x43   : > { %963 = vsyncadd (%p1115_p13), %s327_s10, 4294967280  ;;  %s335_s26 = sand.u32 1, %s1075_s12   ;;  %s693_s27 = sshll.u32 %s1163_s17, 7 }
  0x44   : > { %s336_s13 = scalar_lea.sflag [#allocation8], %s335_s26  ;;  %s1173_s25 = scalar_lea.vmem [#allocation7], %s693_s27 }
  0x45   : > { %965 = dma.done.wait (%p1115_p13), %s336_s13, 2048  }
  0x46   : > { %967 = vsyncadd (%p1115_p13), %s336_s13, 4294965248 }
  0x47   : > { %969 = dma.done.wait (%p47_p1), [#allocation8], 2048  }
  0x48   : > { %971 = vsyncadd (%p47_p1), [#allocation8], 4294965248 }
  0x49   : > { %973 = dma.done.wait (%p47_p1), [#allocation11], 2048  }
  0x4a   : > { %975 = vsyncadd (%p47_p1), [#allocation11], 4294965248  ;;  %386 = sbr.rel (%p686_p3) target bundleno = 82 (0x52), region = 72 }
  0x4f   : > { %vm388_vm0 = vcmask 7168   ;;  %v1000_v0 = vmov 0.0  }
  0x50   : > { %387 = vst [vmem:[#allocation2] sm:$0xff] %v1000_v0 }
  0x51   : > { %389 = vst.msk [vmem:[#allocation3] sm:$0xff] %vm388_vm0, %v1000_v0 }
  0x52 PF: > { %v412_v1 = vld [vmem:[%s1173_s25 + $0x70] sm:$0xff]  ;;  %v413_v2 = vld [vmem:[%s1173_s25 + $0x78] sm:$0xff]  ;;  %v410_v3 = vld [vmem:[%s1173_s25 + $0x60] sm:$0xff]  ;;  %v391_v4 = vlaneseq  ;;  %v1001_v15 = vmov 0.0   ;;  %v1002_v30 = vmov 1.0|1.0  }
  0x53   : > { %v421_v5 = vpack.c.bf16 %v413_v2, %v412_v1  ;;  %v411_v6 = vld [vmem:[%s1173_s25 + $0x68] sm:$0xff]  ;;  %v408_v9 = vld [vmem:[%s1173_s25 + $0x50] sm:$0xff]  ;;  %v409_v10 = vld [vmem:[%s1173_s25 + $0x58] sm:$0xff]  ;;  %vm442_vm3 = vcmask 7168   ;;  %p700_p1 = scmp.ne.s32.totalorder %s1075_s12, 1 }
  0x54   : > { %v420_v7 = vpack.c.bf16 %v411_v6, %v410_v3  ;;  %v1193_v8 = vshrl.u32 %v391_v4, 7  ;;  %v786_v11 = vld [vmem:[%s329_s19] ss:$0 sm:$0xff]  ;;  %v419_v12 = vpack.c.bf16 %v409_v10, %v408_v9  ;;  %v406_v13 = vld [vmem:[%s1173_s25 + $0x40] sm:$0xff]  ;;  %v404_v18 = vld [vmem:[%s1173_s25 + $0x30] sm:$0xff] }
  0x55   : > { %423 = vmatpush.bf16.msra.mxu0 %v421_v5  ;;  %v407_v14 = vld [vmem:[%s1173_s25 + $0x48] sm:$0xff]  ;;  %v405_v19 = vld [vmem:[%s1173_s25 + $0x38] sm:$0xff]  ;;  %v402_v21 = vld [vmem:[%s1173_s25 + $0x20] sm:$0xff] }
  0x56   : > { %vm394_vm1 = vcmp.eq.s32.totalorder %v1193_v8, %v786_v11  ;;  %v418_v17 = vpack.c.bf16 %v407_v14, %v406_v13  ;;  %v417_v20 = vpack.c.bf16 %v405_v19, %v404_v18  ;;  %v403_v22 = vld [vmem:[%s1173_s25 + $0x28] sm:$0xff]  ;;  %v400_v24 = vld [vmem:[%s1173_s25 + $0x10] sm:$0xff]  ;;  %v401_v25 = vld [vmem:[%s1173_s25 + $0x18] sm:$0xff] }
  0x57   : > { %v697_v16 = vsel %vm394_vm1, 1.0, %v1001_v15  ;;  %v416_v23 = vpack.c.bf16 %v403_v22, %v402_v21  ;;  %v415_v26 = vpack.c.bf16 %v401_v25, %v400_v24  ;;  %v398_v27 = vld [vmem:[%s1173_s25] sm:$0xff]  ;;  %v399_v28 = vld [vmem:[%s1173_s25 + $0x8] sm:$0xff]  ;;  %vm698_vm2 = vmpackc.low %vm394_vm1, %vm394_vm1 }
  0x58   : > { %439 = vadd.xlane.f32.xlu0 %v697_v16  ;;  %v414_v29 = vpack.c.bf16 %v399_v28, %v398_v27  ;;  %v438_v31 = vld [vmem:[#allocation3] sm:$0xff]  ;;  %v422_v34 = vld [vmem:[#allocation2] sm:$0xff] }
  0x59   : > { %424 = vmatpush.bf16.msra.mxu0 %v420_v7 }
  0x5d   : > { %425 = vmatpush.bf16.msra.mxu0 %v419_v12 }
  0x61   : > { %426 = vmatpush.bf16.msra.mxu0 %v418_v17 }
  0x65   : > { %427 = vmatpush.bf16.msra.mxu0 %v417_v20 }
  0x69   : > { %428 = vmatpush.bf16.msra.mxu0 %v416_v23 }
  0x6d   : > { %429 = vmatpush.bf16.msra.mxu0 %v415_v26 }
  0x71   : > { %430 = vmatpush.bf16.msra.mxu0 %v414_v29 }
  0x74   : > { %699 = vmatmul.msk.bf16.vlgmr.msra.gmra.mxu0 %vm698_vm2, %v1002_v30 }
  0xcb   : > { %v440_v32 = vpop.xlane.xlu0 %439 }
  0xcc   : > { %v441_v33 = vadd.f32 %v440_v32, %v438_v31 }
  0xce   : > { %443 = vst.msk [vmem:[#allocation3] sm:$0xff] %vm442_vm3, %v441_v33 }
  0xf1   : > { %v432_v35 = vpop.f32.mrf.mxu0 }
  0xf2   : > { %v436_v36 = vadd.f32 %v432_v35, %v422_v34 }
  0xf4   : > { %437 = vst [vmem:[#allocation2] sm:$0xff] %v436_v36 }
  0xf5   : > { %447 = sbr.rel (%p700_p1) target bundleno = 707 (0x2c3), region = 76 }
  0xf9   : > { %v434_v37 = vpop.f32.mrf.mxu0 }
  0xfa   : > { %v448_v38 = vld [vmem:[#allocation3] sm:$0xff]  ;;  %v1003_v41 = vmov 0   ;;  %v471_v44 = vld [vmem:[#allocation9 + $0x60] sm:$0xff]  ;;  %v472_v45 = vld [vmem:[#allocation9 + $0x68] sm:$0xff]  ;;  %vm500_vm4 = vcmp.lt.s32.totalorder %v1193_v8, 4  ;;  %v1004_v9 = vmov 0.0  }
  0xfb   : > { %v473_v39 = vld [vmem:[#allocation9 + $0x70] sm:$0xff]  ;;  %v474_v40 = vld [vmem:[#allocation9 + $0x78] sm:$0xff]  ;;  %787 = vset.pattern.permute.xlu0 %v1003_v41  ;;  %v449_v42 = vmax.f32 %v448_v38, 1.0  ;;  %v481_v46 = vpack.c.bf16 %v472_v45, %v471_v44  ;;  %v467_v50 = vld [vmem:[#allocation9 + $0x40] sm:$0xff]  ;;  %v701_v10 = vsel %vm500_vm4, 1.0, %v1004_v9 }
  0xfc   : > { %v482_v43 = vpack.c.bf16 %v474_v40, %v473_v39  ;;  %v469_v47 = vld [vmem:[#allocation9 + $0x50] sm:$0xff]  ;;  %v470_v48 = vld [vmem:[#allocation9 + $0x58] sm:$0xff]  ;;  %v468_v51 = vld [vmem:[#allocation9 + $0x48] sm:$0xff] }
  0xfd   : > { %792 = vrcp.f32 %v449_v42  ;;  %v480_v49 = vpack.c.bf16 %v470_v48, %v469_v47  ;;  %v479_v53 = vpack.c.bf16 %v468_v51, %v467_v50  ;;  %v465_v54 = vld [vmem:[#allocation9 + $0x30] sm:$0xff]  ;;  %v466_v55 = vld [vmem:[#allocation9 + $0x38] sm:$0xff]  ;;  %v463_v57 = vld [vmem:[#allocation9 + $0x20] sm:$0xff] }
  0xfe   : > { %487 = vmatpush.bf16.msra.mxu0 %v482_v43  ;;  %v478_v56 = vpack.c.bf16 %v466_v55, %v465_v54  ;;  %v464_v58 = vld [vmem:[#allocation9 + $0x28] sm:$0xff]  ;;  %v461_v60 = vld [vmem:[#allocation9 + $0x10] sm:$0xff]  ;;  %v462_v61 = vld [vmem:[#allocation9 + $0x18] sm:$0xff] }
  0xff   : > { %v477_v59 = vpack.c.bf16 %v464_v58, %v463_v57  ;;  %v476_v62 = vpack.c.bf16 %v462_v61, %v461_v60  ;;  %v459_v63 = vld [vmem:[#allocation9] sm:$0xff]  ;;  %v460_v0 = vld [vmem:[#allocation9 + $0x8] sm:$0xff]  ;;  %v559_v13 = vld [vmem:[#allocation10 + $0x70] sm:$0xff] }
 0x100   : > { %v475_v1 = vpack.c.bf16 %v460_v0, %v459_v63  ;;  %v451_v2 = vld [vmem:[#allocation2] sm:$0xff]  ;;  %v560_v14 = vld [vmem:[#allocation10 + $0x78] sm:$0xff]  ;;  %v557_v18 = vld [vmem:[#allocation10 + $0x60] sm:$0xff] }
 0x101   : > { %v788_v6 = vld [vmem:[%s1249_s3] ss:$0 sm:$0xff]  ;;  %v568_v15 = vpack.c.bf16 %v560_v14, %v559_v13  ;;  %v555_v24 = vld [vmem:[#allocation10 + $0x50] sm:$0xff]  ;;  %v556_v8 = vld [vmem:[#allocation10 + $0x58] sm:$0xff] }
 0x102   : > { %488 = vmatpush.bf16.msra.mxu0 %v481_v46  ;;  %v558_v19 = vld [vmem:[#allocation10 + $0x68] sm:$0xff]  ;;  %v566_v25 = vpack.c.bf16 %v556_v8, %v555_v24  ;;  %v553_v28 = vld [vmem:[#allocation10 + $0x40] sm:$0xff]  ;;  %v551_v33 = vld [vmem:[#allocation10 + $0x30] sm:$0xff] }
 0x103   : > { %v793_v52 = vpop.eup %792  ;;  %573 = vmatpush.bf16.msra.mxu1 %v568_v15  ;;  %v567_v21 = vpack.c.bf16 %v558_v19, %v557_v18  ;;  %v554_v29 = vld [vmem:[#allocation10 + $0x48] sm:$0xff]  ;;  %v552_v34 = vld [vmem:[#allocation10 + $0x38] sm:$0xff]  ;;  %v549_v38 = vld [vmem:[#allocation10 + $0x20] sm:$0xff] }
 0x104   : > { %454 = vperm.xlu0 %787, %v793_v52   ;;  %v565_v30 = vpack.c.bf16 %v554_v29, %v553_v28  ;;  %v564_v35 = vpack.c.bf16 %v552_v34, %v551_v33  ;;  %v550_v39 = vld [vmem:[#allocation10 + $0x28] sm:$0xff]  ;;  %v547_v43 = vld [vmem:[#allocation10 + $0x10] sm:$0xff]  ;;  %v548_v44 = vld [vmem:[#allocation10 + $0x18] sm:$0xff] }
 0x105   : > { %v563_v40 = vpack.c.bf16 %v550_v39, %v549_v38  ;;  %v545_v45 = vld [vmem:[#allocation10] sm:$0xff]  ;;  %v562_v46 = vpack.c.bf16 %v548_v44, %v547_v43  ;;  %v546_v47 = vld [vmem:[#allocation10 + $0x8] sm:$0xff] }
 0x106   : > { %489 = vmatpush.bf16.msra.mxu0 %v480_v49  ;;  %v561_v49 = vpack.c.bf16 %v546_v47, %v545_v45  ;;  %v789_v61 = vld [vmem:[%s1250_s4] ss:$0 sm:$0xff] }
 0x107   : > { %574 = vmatpush.bf16.msra.mxu1 %v567_v21  ;;  %v790_v0 = vld [vmem:[%s1251_s5] ss:$0 sm:$0xff] }
 0x10a   : > { %490 = vmatpush.bf16.msra.mxu0 %v479_v53 }
 0x10b   : > { %575 = vmatpush.bf16.msra.mxu1 %v566_v25 }
 0x10e   : > { %491 = vmatpush.bf16.msra.mxu0 %v478_v56 }
 0x10f   : > { %576 = vmatpush.bf16.msra.mxu1 %v565_v30 }
 0x112   : > { %492 = vmatpush.bf16.msra.mxu0 %v477_v59 }
 0x113   : > { %577 = vmatpush.bf16.msra.mxu1 %v564_v35 }
 0x116   : > { %493 = vmatpush.bf16.msra.mxu0 %v476_v62 }
 0x117   : > { %578 = vmatpush.bf16.msra.mxu1 %v563_v40 }
 0x11a   : > { %494 = vmatpush.bf16.msra.mxu0 %v475_v1 }
 0x11b   : > { %579 = vmatpush.bf16.msra.mxu1 %v562_v46 }
 0x11f   : > { %580 = vmatpush.bf16.msra.mxu1 %v561_v49 }
 0x176   : > { %v455_v3 = vpop.permute.xlu0 %454 }
 0x177   : > { %v457_v4 = vmul.f32 %v455_v3, %v451_v2 }
 0x179   : > { %v458_v5 = vpack.c.bf16 %v457_v4, %v457_v4 }
 0x17b   : > { %495 = vmatmul.bf16.vlgmr.msra.gmra.mxu0 %v458_v5  ;;  %v791_v5 = vld [vmem:[%s1253_s7] ss:$0 sm:$0xff] }
 0x1f8   : > { %v496_v7 = vpop.f32.mrf.mxu0 }
 0x1f9   : > { %v497_v11 = vadd.f32 %v788_v6, %v496_v7 }
 0x1fb   : > { %v503_v12 = vmul.f32 %v701_v10, %v497_v11 }
 0x1fd   : > { %v504_v16 = vrot.slane %v503_v12, 4 }
 0x1ff   : > { %v505_v17 = vadd.f32 %v504_v16, %v503_v12 }
 0x200   : > { %v498_v20 = vpop.f32.mrf.mxu0 }
 0x201   : > { %v506_v22 = vrot.slane %v505_v17, 2 }
 0x203   : > { %v507_v23 = vadd.f32 %v506_v22, %v505_v17 }
 0x205   : > { %v508_v26 = vrot.slane %v507_v23, 1 }
 0x207   : > { %v509_v27 = vadd.f32 %v508_v26, %v507_v23 }
 0x209   : > { %v510_v31 = vmul.f32 0.25, %v509_v27 }
 0x20b   : > { %v511_v32 = vsub.f32 %v497_v11, %v510_v31 }
 0x20d   : > { %v512_v36 = vmul.f32 %v511_v32, %v511_v32 }
 0x20f   : > { %v513_v37 = vmul.f32 %v701_v10, %v512_v36 }
 0x211   : > { %v514_v41 = vrot.slane %v513_v37, 4 }
 0x213   : > { %v515_v42 = vadd.f32 %v514_v41, %v513_v37 }
 0x215   : > { %v516_v48 = vrot.slane %v515_v42, 2 }
 0x217   : > { %v517_v50 = vadd.f32 %v516_v48, %v515_v42 }
 0x219   : > { %v518_v51 = vrot.slane %v517_v50, 1 }
 0x21b   : > { %v519_v52 = vadd.f32 %v518_v51, %v517_v50 }
 0x21d   : > { %v520_v53 = vmul.f32 0.25, %v519_v52 }
 0x21f   : > { %v521_v54 = vadd.f32 1e-05, %v520_v53 }
 0x221   : > { %794 = vrsqrt.f32 %v521_v54  ;;  %vm528_vm6 = vweird.f32 %v521_v54 }
 0x227   : > { %v795_v55 = vpop.eup %794 }
 0x228   : > { %v523_v56 = vmul.f32 %v795_v55, %v521_v54  ;;  %vm529_vm5 = vweird.f32 %v795_v55 }
 0x229   : > { %vm530_vm7 = vmor %vm528_vm6, %vm529_vm5 }
 0x22a   : > { %v524_v57 = vmul.f32 %v795_v55, %v523_v56 }
 0x22c   : > { %v525_v58 = vmul.f32 0.5, %v524_v57 }
 0x22e   : > { %v526_v59 = vsub.f32 1.5, %v525_v58 }
 0x230   : > { %v527_v60 = vmul.f32 %v795_v55, %v526_v59 }
 0x232   : > { %v531_v62 = vsel %vm530_vm7, %v795_v55, %v527_v60 }
 0x233   : > { %v532_v63 = vmul.f32 %v531_v62, %v511_v32 }
 0x235   : > { %v537_v1 = vmul.f32 %v789_v61, %v532_v63 }
 0x237   : > { %v542_v2 = vadd.f32 %v790_v0, %v537_v1 }
 0x239   : > { %v543_v3 = vmax.f32 %v542_v2, 0.0 }
 0x23b   : > { %v544_v4 = vpack.c.bf16 %v543_v3, %v543_v3 }
 0x23d   : > { %581 = vmatmul.bf16.vlgmr.msra.gmra.mxu1 %v544_v4 }
 0x2ba   : > { %v582_v6 = vpop.f32.mrf.mxu1 }
 0x2bb   : > { %v583_v7 = vadd.f32 %v791_v5, %v582_v6 }
 0x2bd   : > { %586 = vst [vmem:[#allocation12] sm:$0xff] %v583_v7 }
 0x2c2   : > { %v584_v9 = vpop.f32.mrf.mxu1 }
 0x2c3 PF: > { %p742_p3 = scmp.eq.s32.totalorder %s1075_s12, 1  ;;  %s1005_s21 = smov [#allocation12]  }
 0x2c4   : > { %s593_s30 = sshll.u32 %s1005_s21, 4  ;;  %s595_s20 = sshll.u32 %s1254_s8, 4  ;;  %s594_s30 = int_to_ptr.vmem [resolvable:$true] %s593_s30  ;;  %s596_s20 = int_to_ptr.hbm [resolvable:$true] %s595_s20 }
 0x2c5   : > { %720 = dma.vmem_to_hbm [thread:$0]  (%p742_p3), %s594_s30, 128, %s596_s20, [#allocation6]  }
 0x2c6   : > { %977 = dma.done.wait (%p742_p3), [#allocation6], 128  }
 0x2c7   : > { %979 = vsyncadd (%p742_p3), [#allocation6], 4294967168 }
 0x2c8 PF: > { %s1267_s17 = sld [smem:[#allocation18_spill]]  ;;  %p23_p4 = scmp.ge.s32.totalorder %s1099_s23, 4  }
 0x2c9   : > { %s1268_s27 = smov %s986_s28  ;;  %s1269_s28 = smov %s990_s29 }
 0x2ca   : > { %s1271_s30 = smov %s1099_s23  ;;  %25 = sbr.rel (!%p23_p4) target bundleno = 10 (0xa), region = 118 }
 0x2ce   : > { %s1270_s29 = smov %s1267_s17 }
 0x2cf   :  { %609 = vsyncpa [#allocation5], 1 }
 0x2d0   :  { %611 = vsyncpa [#allocation5 + $0x1], 1 }
 0x2d1   :  { %612 = vsyncpa [#allocation8], 1 }
 0x2d2   :  { %614 = vsyncpa [#allocation8 + $0x1], 1 }
 0x2d3   :  { %615 = vsyncpa [#allocation11], 1 }
 0x2d4   :  { %616 = vsyncpa [#allocation6], 1 }
 0x2d5   :  { %618 = vsyncpa [#allocation6 + $0x1], 1 }

</bundles_post_ra>
